<compile_context>
chip_gen: v6e
topology: v6e:2x2x1
jax: 0.10.0
libtpu: 0.0.40
codegen_flags: <defaults>
</compile_context>

<pallas_src>
import jax
import jax.numpy as jnp
from jax.experimental import pallas as pl
from jax.experimental.pallas import tpu as pltpu


_VMEM_BUDGET = 24 * 1024 * 1024   # target for the double-buffered working set
_VMEM_LIMIT = 32 * 1024 * 1024    # scoped-VMEM limit handed to Mosaic


def _round_up(x, m):
    return (x + m - 1) // m * m


def _cdiv(a, b):
    return (a + b - 1) // b


def bilinear_attn_kernel(ctx_ref, proj_ref, valid_ref, out_ref):
    # ctx_ref   : (B_BLK, T_BLK, C)   native dtype
    # proj_ref  : (B_BLK, C)          f32, precomputed question @ W^T + b
    # valid_ref : (B_BLK, T_BLK)      int8, nonzero where the position is valid
    # out_ref   : (B_BLK, T_BLK)      f32 scores, -inf where masked
    ctx = ctx_ref[...].astype(jnp.float32)               # cast after load: free vs DMA
    proj = proj_ref[...]
    # scores[b, t] = sum_c ctx[b, t, c] * proj[b, c]  (VPU mul + lane reduce)
    scores = jnp.sum(ctx * proj[:, None, :], axis=-1)    # (B_BLK, T_BLK)
    valid = valid_ref[...].astype(jnp.int32)
    out_ref[...] = jnp.where(valid == 0, -jnp.inf, scores)


def _plan_tiles(B, T, C, ctx_itemsize):
    """Pick (b_block, t_block, vmem_limit) — padding-aware, no array padding."""
    # Batch block: full B when small (full-dim always legal), else a multiple of 8.
    b_block = B if B <= 32 else 32
    # Sequence block: full T when small; lane-dense multiples of 128 otherwise
    # (ragged tails are handled by Pallas, so no divisibility requirement).
    if T <= 1024:
        t_block = T
    elif T <= 2048:
        t_block = 1024
    else:
        t_block = 2048

    def footprint(bb, tb):
        # Mosaic pads the lane dim to 128 and the sublane dim to the dtype's
        # packing (<=32 rows); everything is double-buffered by BlockSpec.
        lane_c = _round_up(C, 128)
        lane_t = _round_up(tb, 128)
        sub_t = _round_up(tb, 32)
        sub_b = _round_up(bb, 32)
        ctx_b = bb * sub_t * lane_c * ctx_itemsize
        proj_b = sub_b * lane_c * 4
        valid_b = sub_b * lane_t * 1
        out_b = sub_b * lane_t * 4
        return 2 * (ctx_b + proj_b + valid_b + out_b)

    while footprint(b_block, t_block) > _VMEM_BUDGET:
        if b_block > 8:
            b_block = max(8, (b_block // 2) // 8 * 8)
        elif t_block > 128:
            t_block = max(128, (t_block // 2) // 128 * 128)
        else:
            break

    # If everything fits in a single grid step but there is real work, split T
    # in two so the "parallel" axes can shard across TensorCores (v7x).
    if _cdiv(B, b_block) * _cdiv(T, t_block) == 1 and T >= 256:
        t_block = max(128, _round_up(_cdiv(T, 2), 128))

    vmem_limit = min(max(_VMEM_LIMIT, footprint(b_block, t_block) + 4 * 1024 * 1024),
                     56 * 1024 * 1024)
    return b_block, t_block, vmem_limit


@jax.jit
def bilinear_attention(context, question, context_mask, weight, bias):
    B, T, C = context.shape
    ctx_itemsize = jnp.dtype(context.dtype).itemsize

    # Question projection hoisted out of the kernel (one tiny XLA matmul).
    proj = (question.astype(jnp.float32) @ weight.astype(jnp.float32).T
            + bias.astype(jnp.float32))                      # (B, C) f32

    # Mask streamed as 1-byte "valid" flags (B*T bytes of HBM traffic).
    valid = (context_mask != 0).astype(jnp.int8)             # (B, T)

    b_block, t_block, vmem_limit = _plan_tiles(B, T, C, ctx_itemsize)
    grid = (_cdiv(B, b_block), _cdiv(T, t_block))

    out = pl.pallas_call(
        bilinear_attn_kernel,
        out_shape=jax.ShapeDtypeStruct((B, T), jnp.float32),
        grid_spec=pltpu.PrefetchScalarGridSpec(
            num_scalar_prefetch=0,
            grid=grid,
            in_specs=[
                # context tile: (B_BLK, T_BLK, C); lane dim equals full C.
                pl.BlockSpec((b_block, t_block, C), lambda bi, ti: (bi, ti, 0)),
                # per-batch projection, resident across the T-tile axis.
                pl.BlockSpec((b_block, C), lambda bi, ti: (bi, 0)),
                # int8 valid-mask tile, lane-dense in T.
                pl.BlockSpec((b_block, t_block), lambda bi, ti: (bi, ti)),
            ],
            out_specs=pl.BlockSpec((b_block, t_block), lambda bi, ti: (bi, ti)),
        ),
        compiler_params=pltpu.CompilerParams(
            dimension_semantics=("parallel", "parallel"),
            vmem_limit_bytes=vmem_limit,
        ),
        cost_estimate=pl.CostEstimate(
            flops=2 * B * T * C,
            transcendentals=0,
            bytes_accessed=B * T * C * ctx_itemsize + B * T * 5 + B * C * 4,
        ),
    )(context, proj, valid)
    return out


def reference(context, question, context_mask, weight, bias):
    proj = question @ weight.T + bias                 # (B, C)
    scores = jnp.einsum("btc,bc->bt", context, proj)  # (B, T)
    return jnp.where(context_mask == 0, -jnp.inf, scores)


if __name__ == "__main__":
    B, T = 2, 16
    context_dim, question_dim = 32, 24

    key = jax.random.PRNGKey(0)
    k_ctx, k_q, k_w, k_b = jax.random.split(key, 4)

    context = jax.random.normal(k_ctx, (B, T, context_dim), dtype=jnp.float32)
    question = jax.random.normal(k_q, (B, question_dim), dtype=jnp.float32)

    # Deterministic Linear(question_dim, context_dim) parameters.
    bound = 1.0 / (question_dim ** 0.5)
    weight = jax.random.uniform(k_w, (context_dim, question_dim),
                                minval=-bound, maxval=bound, dtype=jnp.float32)
    bias = jax.random.uniform(k_b, (context_dim,),
                              minval=-bound, maxval=bound, dtype=jnp.float32)

    # Mask: last few positions of each sequence are padding (== 0).
    lengths = jnp.array([T, T - 5])
    context_mask = (jnp.arange(T)[None, :] < lengths[:, None]).astype(jnp.float32)

    out = bilinear_attention(context, question, context_mask, weight, bias)
    out = jax.block_until_ready(out)

    ref = reference(context, question, context_mask, weight, bias)
    valid = context_mask != 0

    assert out.shape == (B, T)
    # Every masked position must be exactly -inf.
    assert bool(jnp.all(jnp.isneginf(jnp.where(valid, -jnp.inf, out))))
    # Every valid position must be finite and match the reference.
    assert bool(jnp.all(jnp.isfinite(jnp.where(valid, out, 0.0))))
    assert jnp.allclose(jnp.where(valid, out, 0.0),
                        jnp.where(valid, ref, 0.0), atol=1e-4, rtol=1e-4)

    print("KERNEL_OK")
</pallas_src>

<mosaic_0001>
module attributes {stable_mosaic.version = 11 : i64} {
  func.func @bilinear_attn_kernel(%arg0: i32, %arg1: i32, %arg2: memref<2x16x32xf32, #tpu.memory_space<vmem>>, %arg3: memref<2x32xf32, #tpu.memory_space<vmem>>, %arg4: memref<2x16xi8, #tpu.memory_space<vmem>>, %arg5: memref<2x16xf32, #tpu.memory_space<vmem>>) attributes {dimension_semantics = [#tpu.dimension_semantics<parallel>, #tpu.dimension_semantics<parallel>], iteration_bounds = array<i64: 1, 1>, scalar_prefetch = 0 : i64, scratch_operands = 0 : i64, tpu.core_type = #tpu.core_type<tc>, window_params = [{transform_indices = @transform_0, window_bounds = array<i64: 2, 16, 32>}, {transform_indices = @transform_1, window_bounds = array<i64: 2, 32>}, {transform_indices = @transform_2, window_bounds = array<i64: 2, 16>}, {transform_indices = @transform_3, window_bounds = array<i64: 2, 16>}]} {
    %c0 = arith.constant 0 : index
    %c0_0 = arith.constant 0 : index
    %c0_1 = arith.constant 0 : index
    %0 = vector.load %arg2[%c0, %c0_0, %c0_1] : memref<2x16x32xf32, #tpu.memory_space<vmem>>, vector<2x16x32xf32>
    %c0_2 = arith.constant 0 : index
    %c0_3 = arith.constant 0 : index
    %1 = vector.load %arg3[%c0_2, %c0_3] : memref<2x32xf32, #tpu.memory_space<vmem>>, vector<2x32xf32>
    %2 = vector.shape_cast %1 : vector<2x32xf32> to vector<2x1x32xf32>
    %3 = vector.broadcast %2 : vector<2x1x32xf32> to vector<2x16x32xf32>
    %4 = arith.mulf %0, %3 : vector<2x16x32xf32>
    %cst = arith.constant dense<0.000000e+00> : vector<2x16xf32>
    %5 = vector.multi_reduction <add>, %4, %cst [2] : vector<2x16x32xf32> to vector<2x16xf32>
    %c0_4 = arith.constant 0 : index
    %c0_5 = arith.constant 0 : index
    %6 = vector.load %arg4[%c0_4, %c0_5] : memref<2x16xi8, #tpu.memory_space<vmem>>, vector<2x16xi8>
    %7 = arith.extsi %6 : vector<2x16xi8> to vector<2x16xi32>
    %c0_i32 = arith.constant 0 : i32
    %8 = vector.broadcast %c0_i32 : i32 to vector<2x16xi32>
    %9 = arith.cmpi eq, %7, %8 : vector<2x16xi32>
    %cst_6 = arith.constant 0xFF800000 : f32
    %10 = vector.broadcast %cst_6 : f32 to vector<2x16xf32>
    %11 = arith.select %9, %10, %5 : vector<2x16xi1>, vector<2x16xf32>
    %c0_7 = arith.constant 0 : index
    %c0_8 = arith.constant 0 : index
    %12 = vector.load %arg5[%c0_7, %c0_8] : memref<2x16xf32, #tpu.memory_space<vmem>>, vector<2x16xf32>
    tpu.vector_store %arg5[%c0_7, %c0_8], %11 {strides = array<i32>} : memref<2x16xf32, #tpu.memory_space<vmem>>, vector<2x16xf32>,
    return
  }
  func.func @transform_0(%arg0: i32, %arg1: i32) -> (i32, i32, i32) {
    %c0_i32 = arith.constant 0 : i32
    %c0_i32_0 = arith.constant 0 : i32
    return %arg0, %arg1, %c0_i32 : i32, i32, i32
  }
  func.func @transform_1(%arg0: i32, %arg1: i32) -> (i32, i32) {
    %c0_i32 = arith.constant 0 : i32
    %c0_i32_0 = arith.constant 0 : i32
    return %arg0, %c0_i32 : i32, i32
  }
  func.func @transform_2(%arg0: i32, %arg1: i32) -> (i32, i32) {
    %c0_i32 = arith.constant 0 : i32
    return %arg0, %arg1 : i32, i32
  }
  func.func @transform_3(%arg0: i32, %arg1: i32) -> (i32, i32) {
    %c0_i32 = arith.constant 0 : i32
    return %arg0, %arg1 : i32, i32
  }
}

</mosaic_0001>

<bundles_post_ra>
// kernel: bilinear_attention.1
= control target key start
LH: loop header
LB: loop body
LE: loop exit
PB: predicated region body
PF: predicated region fallthrough
CT: control target
= control target key end

     0   :  { %v32_v0 = vlaneseq  ;;  %v221_v1 = vmov 1966171168   ;;  %s275_s0 = inlined_call_operand.vmem [shape: f32[2,16,32], index: 0, kind: input, shape index: {}]   ;;  %s276_s1 = inlined_call_operand.vmem [shape: f32[2,32], index: 1, kind: input, shape index: {}]   ;;  %s277_s2 = inlined_call_operand.vmem [shape: s8[2,16], index: 2, kind: input, shape index: {}]   ;;  %s278_s3 = inlined_call_operand.hbm [shape: f32[2,16], index: 3, kind: output, shape index: {}]  }
   0x1   :  { %v30_v2 = vunpack.c.l.s4 %v221_v1  ;;  %v191_v4 = vld.sshfl [vmem:[%s276_s1] sm:$0x11 pattern:$0x75316420] }
   0x2   :  { %v246_v3 = vshrl.u32 %v32_v0, 7 }
   0x3   :  { %8 = vsyncpa [#allocation3], 0  ;;  %v31_v5 = vunpack.c.0.s8 %v30_v2  ;;  %v28_v6 = vcombine.high %v191_v4, %v191_v4  ;;  %v15_v9 = vld [vmem:[%s275_s0] sm:$0xff]  ;;  %v16_v12 = vld [vmem:[%s275_s0 + $0x8] sm:$0xff]  ;;  %vm57_vm0 = vcmask 261120   ;;  %v222_v25 = vmov 0  }
   0x4   :  { %v45_v8 = vsub.s32 0, %v246_v3  ;;  %v17_v13 = vld [vmem:[%s275_s0 + $0x10] sm:$0xff]  ;;  %v18_v14 = vld [vmem:[%s275_s0 + $0x18] sm:$0xff]  ;;  %197 = vset.pattern.permute.xlu0 %v222_v25  ;;  %198 = vset.pattern.permute.xlu1 %v222_v25  ;;  %v223_v26 = vmov 839922192   ;;  %v150_v50 = vand.u32 127, %v32_v0 }
   0x5   :  { %v34_v7 = vsub.s32 %v31_v5, %v246_v3  ;;  %v78_v27 = vunpack.c.l.s4 %v223_v26  ;;  %v224_v28 = vmov 1985246804   ;;  %v70_v54 = vld [vmem:[%s277_s2] sm:$0x1]  ;;  %vm160_vm1 = vcmask 130112   ;;  %s225_s22 = smov [#allocation2]  }
   0x6   :  { %v85_v29 = vunpack.c.l.s4 %v224_v28  ;;  %v155_v51 = vadd.s32 4294967288, %v150_v50  ;;  %v153_v56 = vsub.s32 %v150_v50, %v246_v3  ;;  %v71_v58 = vunpack.c.0.s8 %v70_v54  ;;  %s183_s23 = sshll.u32 %s225_s22, 4  ;;  %s184_s23 = int_to_ptr.vmem [resolvable:$true] %s183_s23 }
   0x7   :  { %v35_v10 = vrot.slane %v191_v4, %v34_v7  ;;  %v42_v11 = vrot.slane %v28_v6, %v34_v7  ;;  %v79_v30 = vunpack.c.0.s8 %v78_v27  ;;  %vm171_vm2 = vcmask 1041409   ;;  %s199_s2 = scalar_lea.vmem %s184_s23, 32  ;;  %p204_p1 = scmp.lt.s32.totalorder %s184_s23, %s184_s23 }
   0x8   :  { %v86_v31 = vunpack.c.0.s8 %v85_v29  ;;  %v158_v53 = vsub.s32 %v155_v51, %v246_v3  ;;  %vm72_vm3 = vcmp.eq.s32.totalorder %v71_v58, 0  ;;  %vm175_vm4 = vcmask 123904   ;;  %p200_p0 = scmp.ne.s32.totalorder %s184_s23, %s199_s2  ;;  %p205_p2 = scmp.lt.s32.totalorder %s199_s2, %s199_s2 }
   0x9   :  { %v46_v15 = vrot.slane %v35_v10, %v45_v8  ;;  %v50_v16 = vrot.slane %v42_v11, %v45_v8  ;;  %v82_v32 = vsub.s32 %v79_v30, %v246_v3 }
   0xa   :  { %v89_v33 = vsub.s32 %v86_v31, %v246_v3  ;;  %p206_p3 = por %p205_p2, %p204_p1 }
   0xb   :  { %v53_v17 = vmul.f32 %v46_v15, %v15_v9  ;;  %v54_v18 = vmul.f32 %v46_v15, %v16_v12  ;;  %v55_v19 = vmul.f32 %v50_v16, %v17_v13  ;;  %v56_v20 = vmul.f32 %v50_v16, %v18_v14 }
   0xc   :  { %p207_p4 = pnand %p206_p3, %p200_p0 }
   0xd   :  { %v58_v21 = vsel %vm57_vm0, %v53_v17, 0.0  ;;  %v64_v22 = vsel %vm57_vm0, %v55_v19, 0.0  ;;  %v61_v23 = vsel %vm57_vm0, %v54_v18, 0.0  ;;  %v67_v24 = vsel %vm57_vm0, %v56_v20, 0.0 }
   0xe   :  { %59 = vadd.xlane.f32.xlu0 %v58_v21  ;;  %65 = vadd.xlane.f32.xlu1 %v64_v22 }
  0x12   :  { %62 = vadd.xlane.f32.xlu0 %v61_v23  ;;  %68 = vadd.xlane.f32.xlu1 %v67_v24 }
  0x97   :  { %v60_v34 = vpop.xlane.xlu0 %59  ;;  %v66_v35 = vpop.xlane.xlu1 %65 }
  0x98   :  { %v83_v36 = vrot.slane %v60_v34, %v82_v32  ;;  %v90_v37 = vrot.slane %v60_v34, %v89_v33  ;;  %v111_v42 = vrot.slane %v66_v35, %v82_v32  ;;  %v118_v43 = vrot.slane %v66_v35, %v89_v33 }
  0x9a   :  { %v133_v38 = vcombine.low %v83_v36, %v90_v37  ;;  %v135_v46 = vcombine.low %v111_v42, %v118_v43 }
  0x9b   :  { %v63_v39 = vpop.xlane.xlu0 %62  ;;  %v69_v44 = vpop.xlane.xlu1 %68 }
  0x9c   :  { %v97_v40 = vrot.slane %v63_v39, %v82_v32  ;;  %v104_v41 = vrot.slane %v63_v39, %v89_v33  ;;  %138 = vperm.xlu0 %197, %v133_v38   ;;  %v125_v47 = vrot.slane %v69_v44, %v82_v32  ;;  %v132_v48 = vrot.slane %v69_v44, %v89_v33 }
  0x9e   :  { %v134_v45 = vcombine.low %v97_v40, %v104_v41  ;;  %v136_v49 = vcombine.low %v125_v47, %v132_v48 }
  0xa0   :  { %141 = vperm.xlu1 %198, %v134_v45  }
  0xa4   :  { %144 = vperm.xlu1 %198, %v135_v46  }
  0xa8   :  { %147 = vperm.xlu1 %198, %v136_v49  }
 0x117   :  { %v139_v57 = vpop.permute.xlu0 %138 }
 0x118   :  { %v154_v61 = vrot.slane %v139_v57, %v153_v56 }
 0x11b   :  { %v142_v52 = vpop.permute.xlu1 %141 }
 0x11c   :  { %v159_v59 = vrot.slane %v142_v52, %v158_v53 }
 0x11e   :  { %v161_v0 = vsel %vm160_vm1, %v159_v59, %v154_v61 }
 0x11f   :  { %v145_v55 = vpop.permute.xlu1 %144 }
 0x120   :  { %v165_v62 = vrot.slane %v145_v55, %v153_v56 }
 0x123   :  { %v148_v60 = vpop.permute.xlu1 %147 }
 0x124   :  { %v169_v63 = vrot.slane %v148_v60, %v158_v53 }
 0x126   :  { %v170_v1 = vsel %vm160_vm1, %v169_v63, %v165_v62 }
 0x127   :  { %v172_v2 = vsel %vm171_vm2, %v170_v1, %v161_v0 }
 0x128   :  { %v174_v4 = vsel %vm72_vm3, -inf, %v172_v2 }
 0x129   :  { %176 = vst.msk [vmem:[#allocation2] sm:$0x3] %vm175_vm4, %v174_v4 }
 0x12a   :  { %210 = shalt.err (!%p207_p4)
}
 0x12b   :  { %186 = dma.vmem_to_hbm [thread:$0]  %s184_s23, 32, %s278_s3, [#allocation3]  }
 0x12c   :  { %219 = dma.done.wait [#allocation3], 32  }
 0x12d   :  { %220 = vsyncadd [#allocation3], 4294967264 }
 0x12e   :  { %190 = vsyncpa [#allocation3], 1 }

</bundles_post_ra>
